<compile_context>
chip_gen: v6e
topology: v6e:2x2x1
jax: 0.10.0
libtpu: 0.0.40
codegen_flags: <defaults>
</compile_context>

<pallas_src>
import functools

import jax
import jax.numpy as jnp
from jax.experimental import pallas as pl
from jax.experimental.pallas import tpu as pltpu

LANE = 128          # lane width: hidden dims padded to this (lane-dense internals)
BF16_SUBLANE = 16   # bf16 sublane quantum: first-layer K dim padded to this if needed


def _round_up(n, m):
    return ((n + m - 1) // m) * m


def _mlp_kernel(num_layers, x_ref, *refs):
    """Fused MLP forward for one batch tile.

    x_ref  : (tb, F)         bf16  (input features, unpadded / 16-aligned)
    W_i    : (d_i, d_{i+1})  bf16  (hidden dims zero-padded to 128)
    b_i    : (1,  d_{i+1})   f32
    out    : (tb, out_dim)   f32   (true output width)
    """
    out_ref = refs[-1]
    param_refs = refs[:-1]

    h = x_ref[...]                                    # bf16 straight into the MXU
    for layer in range(num_layers):
        w_ref = param_refs[2 * layer]
        b_ref = param_refs[2 * layer + 1]
        acc = jnp.dot(h, w_ref[...], preferred_element_type=jnp.float32)
        acc = acc + b_ref[...]                        # f32 bias add (VPU; v5e has no bf16 VPU)
        if layer < num_layers - 1:
            h = jnp.tanh(acc).astype(jnp.bfloat16)    # f32 tanh on the EUP, bf16 for next matmul
        else:
            h = acc
    out_ref[...] = h.astype(out_ref.dtype)


def pad_mlp_params(weights, biases):
    """Prepare parameters for the kernel.

    * weights cast to bf16 (halves weight HBM->VMEM traffic; f32 accumulation in-kernel)
    * hidden dims zero-padded to multiples of 128 (lane-dense intermediates)
    * the true input dim is only padded up to the bf16 sublane quantum (16);
      the true output dim is left completely unpadded.
    Zero rows/cols contribute nothing and tanh(0) = 0, so padding is exact.
    """
    num_layers = len(weights)
    w_pad, b_pad = [], []
    for i, (w, b) in enumerate(zip(weights, biases)):
        di, do = w.shape
        dip = _round_up(di, BF16_SUBLANE) if i == 0 else _round_up(di, LANE)
        dop = do if i == num_layers - 1 else _round_up(do, LANE)
        wp = jnp.zeros((dip, dop), jnp.bfloat16).at[:di, :do].set(w.astype(jnp.bfloat16))
        bp = jnp.zeros((1, dop), jnp.float32).at[:, :do].set(b.astype(jnp.float32))
        w_pad.append(wp)
        b_pad.append(bp)
    return w_pad, b_pad


def mlp_forward(x, weights_pad, biases_pad, *, max_batch_block=512):
    """Fused MLP forward via a single Pallas kernel.

    x:           (B, input_size) f32 or bf16
    weights_pad: list of bf16 weights from pad_mlp_params
    biases_pad:  list of (1, d) f32 biases
    Returns (B, output_size) f32.
    """
    B, F = x.shape
    num_layers = len(weights_pad)
    in_pad = weights_pad[0].shape[0]
    out_dim = weights_pad[-1].shape[1]

    # bf16 x halves the x DMA bytes; the first matmul is bf16 anyway.
    if x.dtype != jnp.bfloat16:
        x = x.astype(jnp.bfloat16)
    # Input feature dim stays at its true width; only align to the bf16
    # sublane quantum if needed (no-op when input_size % 16 == 0).
    if F < in_pad:
        x = jnp.pad(x, ((0, 0), (0, in_pad - F)))

    # Batch tiling: one grid step for small batches, 512-row tiles for large
    # batches so the x/out tile DMA pipelines behind compute.
    tb = B if B <= max_batch_block else max_batch_block
    b_pad_n = _round_up(B, tb)
    if b_pad_n != B:
        x = jnp.pad(x, ((0, b_pad_n - B), (0, 0)))
    grid_steps = b_pad_n // tb

    flat_args = [x]
    for w, b in zip(weights_pad, biases_pad):
        flat_args.extend([w, b])

    in_specs = [pl.BlockSpec((tb, in_pad), lambda i: (i, 0))]
    for w, b in zip(weights_pad, biases_pad):
        # Parameters are tiny (~100 KiB bf16 total at these dims) and fully
        # resident; their block index is constant across the grid.
        in_specs.append(pl.BlockSpec(w.shape, lambda i: (0, 0)))
        in_specs.append(pl.BlockSpec(b.shape, lambda i: (0, 0)))
    out_specs = pl.BlockSpec((tb, out_dim), lambda i: (i, 0))

    # Megacore split only pays when each TensorCore gets >=2 steps to pipeline.
    semantics = ("parallel",) if grid_steps >= 4 else ("arbitrary",)

    # TODO(synk): for hidden dims in the thousands, add a K (reduction) grid
    # axis with (tk, tn) weight tiles + an f32 VMEM accumulator (pl.when
    # init/finalize, axis "arbitrary"); gate weight residency against ~32 MiB
    # usable scoped VMEM on v7x (64 MiB physical), not v5e/v6e's 128 MiB.
    out = pl.pallas_call(
        functools.partial(_mlp_kernel, num_layers),
        out_shape=jax.ShapeDtypeStruct((b_pad_n, out_dim), jnp.float32),
        grid_spec=pltpu.PrefetchScalarGridSpec(
            num_scalar_prefetch=0,
            grid=(grid_steps,),
            in_specs=in_specs,
            out_specs=out_specs,
        ),
        compiler_params=pltpu.CompilerParams(
            dimension_semantics=semantics,
            # Default scoped-VMEM limit is ample here; no override needed.
        ),
    )(*flat_args)

    return out[:B]


def init_mlp_params(key, input_size, shape, output_size, init_scale):
    """Orthogonal init with gain=init_scale (matches torch.nn.init.orthogonal_
    semantics). Biases are zero-initialized for determinism (torch's Linear
    default is uniform; forward-pass semantics are unchanged)."""
    dims = [input_size] + list(shape) + [output_size]
    ortho = jax.nn.initializers.orthogonal(scale=init_scale, column_axis=-1)
    weights, biases = [], []
    for i in range(len(dims) - 1):
        key, wk = jax.random.split(key)
        weights.append(ortho(wk, (dims[i], dims[i + 1]), jnp.float32))
        biases.append(jnp.zeros((1, dims[i + 1]), jnp.float32))
    return weights, biases


def mlp_reference_f32(x, weights, biases):
    h = x
    for i, (w, b) in enumerate(zip(weights, biases)):
        h = h @ w + b
        if i < len(weights) - 1:
            h = jnp.tanh(h)
    return h


def mlp_reference_bf16(x, weights, biases):
    """Same dtype policy as the kernel: bf16 matmul inputs, f32 accumulation,
    f32 bias add / tanh."""
    h = x.astype(jnp.bfloat16)
    for i, (w, b) in enumerate(zip(weights, biases)):
        h = jnp.dot(h, w.astype(jnp.bfloat16),
                    preferred_element_type=jnp.float32) + b
        if i < len(weights) - 1:
            h = jnp.tanh(h).astype(jnp.bfloat16)
    return h


if __name__ == "__main__":
    key = jax.random.PRNGKey(0)

    # Shapes consistent with the module's constructor:
    #   MLP(shape=(32, 32), activation_fn=nn.Tanh, input_size=16,
    #       output_size=4, init_scale=1.0)
    # batch=256 -> single grid step (tb=256): at these dims the whole kernel
    # is sub-microsecond, so one step beats paying per-step overhead twice.
    batch = 256
    input_size = 16
    hidden_shape = (32, 32)
    output_size = 4
    init_scale = 1.0

    key, xk, pk = jax.random.split(key, 3)
    x = jax.random.normal(xk, (batch, input_size), dtype=jnp.float32)
    weights, biases = init_mlp_params(pk, input_size, hidden_shape,
                                      output_size, init_scale)
    weights_pad, biases_pad = pad_mlp_params(weights, biases)

    out = mlp_forward(x, weights_pad, biases_pad)
    out = jax.block_until_ready(out)
    assert out.shape == (batch, output_size)
    assert out.dtype == jnp.float32

    ref_bf16 = mlp_reference_bf16(x, weights, biases)   # same dtype policy
    ref_f32 = mlp_reference_f32(x, weights, biases)     # full-precision sanity
    assert jnp.allclose(out, ref_bf16, atol=1e-4, rtol=1e-4), \
        "mismatch vs bf16-policy reference"
    assert jnp.allclose(out, ref_f32, atol=5e-2, rtol=5e-2), \
        "mismatch vs f32 reference"

    print("KERNEL_OK")
</pallas_src>

<mosaic_0001>
module attributes {stable_mosaic.version = 11 : i64} {
  func.func @_mlp_kernel(%arg0: i32, %arg1: memref<256x16xbf16, #tpu.memory_space<vmem>>, %arg2: memref<16x128xbf16, #tpu.memory_space<vmem>>, %arg3: memref<1x128xf32, #tpu.memory_space<vmem>>, %arg4: memref<128x128xbf16, #tpu.memory_space<vmem>>, %arg5: memref<1x128xf32, #tpu.memory_space<vmem>>, %arg6: memref<128x4xbf16, #tpu.memory_space<vmem>>, %arg7: memref<1x4xf32, #tpu.memory_space<vmem>>, %arg8: memref<256x4xf32, #tpu.memory_space<vmem>>) attributes {dimension_semantics = [#tpu.dimension_semantics<arbitrary>], iteration_bounds = array<i64: 1>, scalar_prefetch = 0 : i64, scratch_operands = 0 : i64, tpu.core_type = #tpu.core_type<tc>, window_params = [{transform_indices = @transform_0, window_bounds = array<i64: 256, 16>}, {pipeline_mode = #tpu.pipeline_mode<synchronous>, transform_indices = @transform_1, window_bounds = array<i64: 16, 128>}, {pipeline_mode = #tpu.pipeline_mode<synchronous>, transform_indices = @transform_2, window_bounds = array<i64: 1, 128>}, {pipeline_mode = #tpu.pipeline_mode<synchronous>, transform_indices = @transform_3, window_bounds = array<i64: 128, 128>}, {pipeline_mode = #tpu.pipeline_mode<synchronous>, transform_indices = @transform_4, window_bounds = array<i64: 1, 128>}, {pipeline_mode = #tpu.pipeline_mode<synchronous>, transform_indices = @transform_5, window_bounds = array<i64: 128, 4>}, {pipeline_mode = #tpu.pipeline_mode<synchronous>, transform_indices = @transform_6, window_bounds = array<i64: 1, 4>}, {transform_indices = @transform_7, window_bounds = array<i64: 256, 4>}]} {
    %c0 = arith.constant 0 : index
    %c0_0 = arith.constant 0 : index
    %0 = vector.load %arg1[%c0, %c0_0] : memref<256x16xbf16, #tpu.memory_space<vmem>>, vector<256x16xbf16>
    %c0_1 = arith.constant 0 : index
    %c0_2 = arith.constant 0 : index
    %1 = vector.load %arg2[%c0_1, %c0_2] : memref<16x128xbf16, #tpu.memory_space<vmem>>, vector<16x128xbf16>
    %cst = arith.constant dense<0.000000e+00> : vector<256x128xf32>
    %2 = tpu.matmul %0, %1, %cst {dimension_numbers = #tpu.dot_dimension_numbers<[1], [0], [0], [1], [0, 0, 1, 1], [], []>} : vector<256x16xbf16>, vector<16x128xbf16>, vector<256x128xf32> -> vector<256x128xf32>
    %c0_3 = arith.constant 0 : index
    %c0_4 = arith.constant 0 : index
    %3 = vector.load %arg3[%c0_3, %c0_4] : memref<1x128xf32, #tpu.memory_space<vmem>>, vector<1x128xf32>
    %4 = vector.broadcast %3 : vector<1x128xf32> to vector<256x128xf32>
    %5 = arith.addf %2, %4 : vector<256x128xf32>
    %6 = math.tanh %5 : vector<256x128xf32>
    %7 = arith.truncf %6 : vector<256x128xf32> to vector<256x128xbf16>
    %c0_5 = arith.constant 0 : index
    %c0_6 = arith.constant 0 : index
    %8 = vector.load %arg4[%c0_5, %c0_6] : memref<128x128xbf16, #tpu.memory_space<vmem>>, vector<128x128xbf16>
    %cst_7 = arith.constant dense<0.000000e+00> : vector<256x128xf32>
    %9 = tpu.matmul %7, %8, %cst_7 {dimension_numbers = #tpu.dot_dimension_numbers<[1], [0], [0], [1], [0, 0, 1, 1], [], []>} : vector<256x128xbf16>, vector<128x128xbf16>, vector<256x128xf32> -> vector<256x128xf32>
    %c0_8 = arith.constant 0 : index
    %c0_9 = arith.constant 0 : index
    %10 = vector.load %arg5[%c0_8, %c0_9] : memref<1x128xf32, #tpu.memory_space<vmem>>, vector<1x128xf32>
    %11 = vector.broadcast %10 : vector<1x128xf32> to vector<256x128xf32>
    %12 = arith.addf %9, %11 : vector<256x128xf32>
    %13 = math.tanh %12 : vector<256x128xf32>
    %14 = arith.truncf %13 : vector<256x128xf32> to vector<256x128xbf16>
    %c0_10 = arith.constant 0 : index
    %c0_11 = arith.constant 0 : index
    %15 = vector.load %arg6[%c0_10, %c0_11] : memref<128x4xbf16, #tpu.memory_space<vmem>>, vector<128x4xbf16>
    %cst_12 = arith.constant dense<0.000000e+00> : vector<256x4xf32>
    %16 = tpu.matmul %14, %15, %cst_12 {dimension_numbers = #tpu.dot_dimension_numbers<[1], [0], [0], [1], [0, 0, 1, 1], [], []>} : vector<256x128xbf16>, vector<128x4xbf16>, vector<256x4xf32> -> vector<256x4xf32>
    %c0_13 = arith.constant 0 : index
    %c0_14 = arith.constant 0 : index
    %17 = vector.load %arg7[%c0_13, %c0_14] : memref<1x4xf32, #tpu.memory_space<vmem>>, vector<1x4xf32>
    %18 = vector.broadcast %17 : vector<1x4xf32> to vector<256x4xf32>
    %19 = arith.addf %16, %18 : vector<256x4xf32>
    %c0_15 = arith.constant 0 : index
    %c0_16 = arith.constant 0 : index
    %20 = vector.load %arg8[%c0_15, %c0_16] : memref<256x4xf32, #tpu.memory_space<vmem>>, vector<256x4xf32>
    tpu.vector_store %arg8[%c0_15, %c0_16], %19 {strides = array<i32>} : memref<256x4xf32, #tpu.memory_space<vmem>>, vector<256x4xf32>,
    return
  }
  func.func @transform_0(%arg0: i32) -> (i32, i32) {
    %c0_i32 = arith.constant 0 : i32
    %c0_i32_0 = arith.constant 0 : i32
    return %arg0, %c0_i32 : i32, i32
  }
  func.func @transform_1(%arg0: i32) -> (i32, i32) {
    %c0_i32 = arith.constant 0 : i32
    %c0_i32_0 = arith.constant 0 : i32
    %c0_i32_1 = arith.constant 0 : i32
    return %c0_i32, %c0_i32_0 : i32, i32
  }
  func.func @transform_2(%arg0: i32) -> (i32, i32) {
    %c0_i32 = arith.constant 0 : i32
    %c0_i32_0 = arith.constant 0 : i32
    %c0_i32_1 = arith.constant 0 : i32
    return %c0_i32, %c0_i32_0 : i32, i32
  }
  func.func @transform_3(%arg0: i32) -> (i32, i32) {
    %c0_i32 = arith.constant 0 : i32
    %c0_i32_0 = arith.constant 0 : i32
    %c0_i32_1 = arith.constant 0 : i32
    return %c0_i32, %c0_i32_0 : i32, i32
  }
  func.func @transform_4(%arg0: i32) -> (i32, i32) {
    %c0_i32 = arith.constant 0 : i32
    %c0_i32_0 = arith.constant 0 : i32
    %c0_i32_1 = arith.constant 0 : i32
    return %c0_i32, %c0_i32_0 : i32, i32
  }
  func.func @transform_5(%arg0: i32) -> (i32, i32) {
    %c0_i32 = arith.constant 0 : i32
    %c0_i32_0 = arith.constant 0 : i32
    %c0_i32_1 = arith.constant 0 : i32
    return %c0_i32, %c0_i32_0 : i32, i32
  }
  func.func @transform_6(%arg0: i32) -> (i32, i32) {
    %c0_i32 = arith.constant 0 : i32
    %c0_i32_0 = arith.constant 0 : i32
    %c0_i32_1 = arith.constant 0 : i32
    return %c0_i32, %c0_i32_0 : i32, i32
  }
  func.func @transform_7(%arg0: i32) -> (i32, i32) {
    %c0_i32 = arith.constant 0 : i32
    %c0_i32_0 = arith.constant 0 : i32
    return %arg0, %c0_i32 : i32, i32
  }
}

</mosaic_0001>

<bundles_post_ra>
// kernel: tpu_custom_call.1
= control target key start
LH: loop header
LB: loop body
LE: loop exit
PB: predicated region body
PF: predicated region fallthrough
CT: control target
= control target key end

     0   :  { %vm154_vm0 = vcmask 130048   ;;  %vm924_vm1 = vcmask 31744   ;;  %s1783_s1 = inlined_call_operand.vmem [shape: bf16[16,128], index: 1, kind: input, shape index: {}]   ;;  %s1784_s0 = inlined_call_operand.vmem [shape: bf16[256,16], index: 0, kind: input, shape index: {}]   ;;  %s1785_s3 = inlined_call_operand.vmem [shape: bf16[128,128], index: 3, kind: input, shape index: {}]   ;;  %s1786_s5 = inlined_call_operand.vmem [shape: bf16[128,4], index: 5, kind: input, shape index: {}]   ;;  %s1787_s2 = inlined_call_operand.vmem [shape: f32[1,128], index: 2, kind: input, shape index: {}]   ;;  %s1788_s4 = inlined_call_operand.vmem [shape: f32[1,128], index: 4, kind: input, shape index: {}]   ;;  %s1789_s6 = inlined_call_operand.vmem [shape: f32[1,4], index: 6, kind: input, shape index: {}]   ;;  %s1790_s7 = inlined_call_operand.vmem [shape: f32[256,4], index: 7, kind: output, shape index: {}]  }
   0x1   :  { %v1210_v0 = vld [vmem:[%s1783_s1] sm:$0xff]   ;;  %v1212_v2 = vld [vmem:[%s1784_s0 + $0x8] sm:$0xff]   ;;  %v1213_v3 = vld [vmem:[%s1784_s0 + $0x10] sm:$0xff]  }
   0x2   :  { %v1211_v1 = vld [vmem:[%s1784_s0] sm:$0xff]   ;;  %1078 = vmatprep.subr.bf16.mxu0 %v1210_v0  ;;  %1208 = vmatprep.subr.bf16.mxu1 %v1210_v0  ;;  %v1214_v4 = vld [vmem:[%s1784_s0 + $0x18] sm:$0xff]   ;;  %v1220_v7 = vld [vmem:[%s1784_s0 + $0x48] sm:$0xff]  }
   0x3   :  { %1079 = vmatpush3.bf16.msra.mxu0 %v1210_v0  ;;  %1080 = vmatprep.mubr.msk.bf16.mxu0 %vm154_vm0, %v1211_v1  ;;  %v1215_v5 = vld [vmem:[%s1784_s0 + $0x20] sm:$0xff]   ;;  %v1221_v8 = vld [vmem:[%s1784_s0 + $0x50] sm:$0xff]   ;;  %v1222_v9 = vld [vmem:[%s1784_s0 + $0x58] sm:$0xff]  }
   0x4   :  { %1209 = vmatpush3.bf16.msra.mxu1 %v1210_v0  ;;  %v1219_v6 = vld [vmem:[%s1784_s0 + $0x40] sm:$0xff]   ;;  %v1216_v10 = vld [vmem:[%s1784_s0 + $0x28] sm:$0xff]   ;;  %v1217_v12 = vld [vmem:[%s1784_s0 + $0x30] sm:$0xff]  }
   0x5   :  { %1096 = vmatprep.mubr.msk.bf16.mxu1 %vm154_vm0, %v1219_v6  ;;  %v1223_v11 = vld [vmem:[%s1784_s0 + $0x60] sm:$0xff]   ;;  %v1227_v13 = vld [vmem:[%s1785_s3 + $0x38] sm:$0xff]   ;;  %v1228_v14 = vld [vmem:[%s1785_s3 + $0x30] sm:$0xff]  }
   0x6   :  { %1081 = vmatmul.mubr.msk.bf16.vlgmr.msra.gmra.mxu0 %vm154_vm0, %v1212_v2  ;;  %1112 = vmatprep.subr.bf16.mxu1 %v1227_v13  ;;  %v1224_v15 = vld [vmem:[%s1784_s0 + $0x68] sm:$0xff]   ;;  %v1225_v16 = vld [vmem:[%s1784_s0 + $0x70] sm:$0xff]   ;;  %v1218_v17 = vld [vmem:[%s1784_s0 + $0x38] sm:$0xff]  }
   0x7   :  { %1084 = vmatprep.mubr.msk.bf16.mxu0 %vm154_vm0, %v1213_v3  ;;  %1097 = vmatmul.mubr.msk.bf16.vlgmr.msra.gmra.mxu1 %vm154_vm0, %v1220_v7  ;;  %v1226_v18 = vld [vmem:[%s1784_s0 + $0x78] sm:$0xff]   ;;  %v1229_v19 = vld [vmem:[%s1785_s3 + $0x28] sm:$0xff]   ;;  %v1230_v20 = vld [vmem:[%s1785_s3 + $0x20] sm:$0xff]  }
   0x8   :  { %1100 = vmatprep.mubr.msk.bf16.mxu1 %vm154_vm0, %v1221_v8  ;;  %1113 = vmatpush3.bf16.msra.mxu1 %v1227_v13  ;;  %v1231_v21 = vld [vmem:[%s1785_s3 + $0x18] sm:$0xff]   ;;  %v1232_v22 = vld [vmem:[%s1785_s3 + $0x10] sm:$0xff]   ;;  %v1233_v23 = vld [vmem:[%s1785_s3 + $0x8] sm:$0xff]  }
   0x9   :  { %1114 = vmatprep.subr.bf16.mxu1 %v1228_v14  ;;  %v1234_v24 = vld [vmem:[%s1785_s3] sm:$0xff]   ;;  %v1235_v25 = vld [vmem:[%s1786_s5 + $0x38] sm:$0xff]   ;;  %v1236_v26 = vld [vmem:[%s1786_s5 + $0x30] sm:$0xff]  }
   0xa   :  { %1160 = vmatprep.subr.bf16.mxu0 %v1235_v25  ;;  %v1511_v28 = vld [vmem:[%s1787_s2] ss:$0 sm:$0xff] }
   0xb   :  { %1161 = vmatpush3.bf16.msra.mxu0 %v1235_v25 }
   0xc   :  { %1115 = vmatpush3.bf16.msra.mxu1 %v1228_v14  ;;  %1162 = vmatprep.subr.bf16.mxu0 %v1236_v26 }
   0xd   :  { %1116 = vmatprep.subr.bf16.mxu1 %v1229_v19 }
   0xe   :  { %1085 = vmatmul.mubr.msk.bf16.gmra.mxu0 %vm154_vm0, %v1214_v4 }
   0xf   :  { %1088 = vmatprep.mubr.msk.bf16.mxu0 %vm154_vm0, %v1215_v5  ;;  %1101 = vmatmul.mubr.msk.bf16.gmra.mxu1 %vm154_vm0, %v1222_v9 }
  0x10   :  { %1104 = vmatprep.mubr.msk.bf16.mxu1 %vm154_vm0, %v1223_v11  ;;  %1117 = vmatpush3.bf16.msra.mxu1 %v1229_v19 }
  0x11   :  { %1118 = vmatprep.subr.bf16.mxu1 %v1230_v20  ;;  %1163 = vmatpush3.bf16.msra.mxu0 %v1236_v26 }
  0x14   :  { %1119 = vmatpush3.bf16.msra.mxu1 %v1230_v20 }
  0x15   :  { %1120 = vmatprep.subr.bf16.mxu1 %v1231_v21 }
  0x16   :  { %1089 = vmatmul.mubr.msk.bf16.gmra.mxu0 %vm154_vm0, %v1216_v10 }
  0x17   :  { %1092 = vmatprep.mubr.msk.bf16.mxu0 %vm154_vm0, %v1217_v12  ;;  %1105 = vmatmul.mubr.msk.bf16.gmra.mxu1 %vm154_vm0, %v1224_v15 }
  0x18   :  { %1108 = vmatprep.mubr.msk.bf16.mxu1 %vm154_vm0, %v1225_v16  ;;  %1121 = vmatpush3.bf16.msra.mxu1 %v1231_v21 }
  0x19   :  { %1122 = vmatprep.subr.bf16.mxu1 %v1232_v22 }
  0x1c   :  { %1123 = vmatpush3.bf16.msra.mxu1 %v1232_v22 }
  0x1d   :  { %1124 = vmatprep.subr.bf16.mxu1 %v1233_v23 }
  0x1e   :  { %1093 = vmatmul.mubr.msk.bf16.gmra.mxu0 %vm154_vm0, %v1218_v17 }
  0x1f   :  { %1109 = vmatmul.mubr.msk.bf16.gmra.mxu1 %vm154_vm0, %v1226_v18 }
  0x20   :  { %1125 = vmatpush3.bf16.msra.mxu1 %v1233_v23 }
  0x21   :  { %1126 = vmatprep.subr.bf16.mxu1 %v1234_v24 }
  0x24   :  { %1127 = vmatpush3.bf16.msra.mxu1 %v1234_v24 }
  0xc6   :  { %v1082_v27 = vpop.f32.mrf.mxu0 }
  0xc7   :  { %v246_v33 = vadd.f32 %v1082_v27, %v1511_v28  ;;  %v1516_v35 = vpop.f32.mrf.mxu1 }
  0xc8   :  { %v237_v29 = vpop.f32.mrf.mxu0  ;;  %v310_v22 = vadd.f32 %v1516_v35, %v1511_v28 }
  0xc9   :  { %v238_v30 = vadd.f32 %v1511_v28, %v237_v29  ;;  %v301_v38 = vpop.f32.mrf.mxu1 }
  0xca   :  { %v1083_v31 = vpop.f32.mrf.mxu0  ;;  %v302_v5 = vadd.f32 %v1511_v28, %v301_v38 }
  0xcb   :  { %v249_v32 = vadd.f32 %v1083_v31, %v1511_v28  ;;  %1243 = vtanh.f32 %v238_v30  ;;  %v1519_v40 = vpop.f32.mrf.mxu1 }
  0xcc   :  { %v240_v34 = vpop.f32.mrf.mxu0  ;;  %v313_v26 = vadd.f32 %v1519_v40, %v1511_v28 }
  0xcd   :  { %v241_v36 = vadd.f32 %v1511_v28, %v240_v34  ;;  %1245 = vtanh.f32 %v249_v32  ;;  %v304_v43 = vpop.f32.mrf.mxu1 }
  0xce   :  { %v1086_v37 = vpop.f32.mrf.mxu0  ;;  %v305_v7 = vadd.f32 %v1511_v28, %v304_v43 }
  0xcf   :  { %1247 = vtanh.f32 %v241_v36  ;;  %v262_v45 = vadd.f32 %v1086_v37, %v1511_v28  ;;  %v1524_v47 = vpop.f32.mrf.mxu1 }
  0xd0   :  { %1249 = vtanh.f32 %v246_v33  ;;  %v253_v39 = vpop.f32.mrf.mxu0  ;;  %v326_v35 = vadd.f32 %v1524_v47, %v1511_v28 }
  0xd1   :  { %v254_v41 = vadd.f32 %v1511_v28, %v253_v39  ;;  %v317_v50 = vpop.f32.mrf.mxu1 }
  0xd2   :  { %v1087_v42 = vpop.f32.mrf.mxu0  ;;  %v318_v23 = vadd.f32 %v1511_v28, %v317_v50 }
  0xd3   :  { %v265_v44 = vadd.f32 %v1087_v42, %v1511_v28  ;;  %1251 = vtanh.f32 %v254_v41  ;;  %v1527_v52 = vpop.f32.mrf.mxu1 }
  0xd4   :  { %v256_v46 = vpop.f32.mrf.mxu0  ;;  %v329_v41 = vadd.f32 %v1527_v52, %v1511_v28 }
  0xd5   :  { %v257_v48 = vadd.f32 %v1511_v28, %v256_v46  ;;  %1253 = vtanh.f32 %v265_v44  ;;  %v320_v56 = vpop.f32.mrf.mxu1 }
  0xd6   :  { %v1090_v49 = vpop.f32.mrf.mxu0  ;;  %v321_v24 = vadd.f32 %v1511_v28, %v320_v56 }
  0xd7   :  { %1255 = vtanh.f32 %v257_v48  ;;  %v278_v60 = vadd.f32 %v1090_v49, %v1511_v28  ;;  %v1532_v62 = vpop.f32.mrf.mxu1 }
  0xd8   :  { %1257 = vtanh.f32 %v262_v45  ;;  %v269_v51 = vpop.f32.mrf.mxu0  ;;  %v1244_v54 = vpop.eup %1243  ;;  %v342_v50 = vadd.f32 %v1532_v62, %v1511_v28 }
  0xd9   :  { %v270_v53 = vadd.f32 %v1511_v28, %v269_v51  ;;  %v333_v4 = vpop.f32.mrf.mxu1 }
  0xda   :  { %v1091_v55 = vpop.f32.mrf.mxu0  ;;  %v1246_v57 = vpop.eup %1245  ;;  %v334_v37 = vadd.f32 %v1511_v28, %v333_v4 }
  0xdb   :  { %v281_v58 = vadd.f32 %v1091_v55, %v1511_v28  ;;  %1259 = vtanh.f32 %v270_v53  ;;  %v1538_v11 = vpop.f32.mrf.mxu1 }
  0xdc   :  { %v1248_v59 = vpop.eup %1247  ;;  %v272_v61 = vpop.f32.mrf.mxu0  ;;  %v345_v56 = vadd.f32 %v1538_v11, %v1511_v28 }
  0xdd   :  { %v1250_v63 = vpop.eup %1249  ;;  %v273_v0 = vadd.f32 %v1511_v28, %v272_v61  ;;  %v396_v1 = vpack.c.bf16 %v1248_v59, %v1244_v54  ;;  %1261 = vtanh.f32 %v281_v58  ;;  %v336_v21 = vpop.f32.mrf.mxu1 }
  0xde   :  { %v1094_v2 = vpop.f32.mrf.mxu0  ;;  %v397_v3 = vpack.c.bf16 %v1246_v57, %v1250_v63  ;;  %v337_v39 = vadd.f32 %v1511_v28, %v336_v21 }
  0xdf   :  { %1263 = vtanh.f32 %v273_v0  ;;  %1128 = vmatprep.mubr.bf16.mxu1 %v396_v1  ;;  %v294_v15 = vadd.f32 %v1094_v2, %v1511_v28  ;;  %v1110_v27 = vpop.f32.mrf.mxu1 }
  0xe0   :  { %1265 = vtanh.f32 %v278_v60  ;;  %v285_v6 = vpop.f32.mrf.mxu0  ;;  %1129 = vmatmul.mubr.bf16.vlgmr.msra.gmra.mxu1 %v397_v3  ;;  %v1252_v9 = vpop.eup %1251  ;;  %v358_v62 = vadd.f32 %v1110_v27, %v1511_v28 }
  0xe1   :  { %v286_v8 = vadd.f32 %v1511_v28, %v285_v6  ;;  %1267 = vtanh.f32 %v302_v5  ;;  %v349_v34 = vpop.f32.mrf.mxu1 }
  0xe2   :  { %v1095_v10 = vpop.f32.mrf.mxu0  ;;  %v1254_v12 = vpop.eup %1253  ;;  %1269 = vtanh.f32 %v305_v7  ;;  %v350_v52 = vadd.f32 %v1511_v28, %v349_v34 }
  0xe3   :  { %v297_v13 = vadd.f32 %v1095_v10, %v1511_v28  ;;  %1271 = vtanh.f32 %v286_v8  ;;  %v1111_v42 = vpop.f32.mrf.mxu1 }
  0xe4   :  { %v1256_v14 = vpop.eup %1255  ;;  %v288_v16 = vpop.f32.mrf.mxu0  ;;  %v361_v0 = vadd.f32 %v1111_v42, %v1511_v28 }
  0xe5   :  { %v1258_v17 = vpop.eup %1257  ;;  %v289_v18 = vadd.f32 %v1511_v28, %v288_v16  ;;  %v398_v19 = vpack.c.bf16 %v1256_v14, %v1252_v9  ;;  %1273 = vtanh.f32 %v297_v13  ;;  %v352_v49 = vpop.f32.mrf.mxu1  ;;  %v1238_v13 = vld [vmem:[%s1786_s5 + $0x20] sm:$0xff]   ;;  %v1239_v14 = vld [vmem:[%s1786_s5 + $0x18] sm:$0xff]   ;;  %v1241_v16 = vld [vmem:[%s1786_s5 + $0x8] sm:$0xff]  }
  0xe6   :  { %v399_v20 = vpack.c.bf16 %v1254_v12, %v1258_v17  ;;  %v353_v54 = vadd.f32 %v1511_v28, %v352_v49  ;;  %v1237_v28 = vld [vmem:[%s1786_s5 + $0x28] sm:$0xff]   ;;  %v1242_v17 = vld [vmem:[%s1786_s5] sm:$0xff]  }
  0xe7   :  { %1275 = vtanh.f32 %v289_v18  ;;  %1132 = vmatprep.mubr.bf16.mxu1 %v398_v19  ;;  %1164 = vmatprep.subr.bf16.mxu0 %v1237_v28  ;;  %v1584_v19 = vld [vmem:[%s1788_s4] ss:$0 sm:$0xff] }
  0xe8   :  { %1277 = vtanh.f32 %v294_v15  ;;  %1133 = vmatmul.mubr.bf16.gmra.mxu1 %v399_v20  ;;  %v1260_v25 = vpop.eup %1259  ;;  %1165 = vmatpush3.bf16.msra.mxu0 %v1237_v28  ;;  %v1240_v15 = vld [vmem:[%s1786_s5 + $0x10] sm:$0xff]  }
  0xe9   :  { %1279 = vtanh.f32 %v310_v22  ;;  %1166 = vmatprep.subr.bf16.mxu0 %v1238_v13 }
  0xea   :  { %v1262_v29 = vpop.eup %1261  ;;  %1281 = vtanh.f32 %v318_v23 }
  0xeb   :  { %1283 = vtanh.f32 %v321_v24 }
  0xec   :  { %v1264_v30 = vpop.eup %1263  ;;  %1285 = vtanh.f32 %v313_v26  ;;  %1167 = vmatpush3.bf16.msra.mxu0 %v1238_v13 }
  0xed   :  { %v1266_v31 = vpop.eup %1265  ;;  %v400_v32 = vpack.c.bf16 %v1264_v30, %v1260_v25  ;;  %1287 = vtanh.f32 %v326_v35  ;;  %1168 = vmatprep.subr.bf16.mxu0 %v1239_v14 }
  0xee   :  { %v401_v33 = vpack.c.bf16 %v1262_v29, %v1266_v31  ;;  %v1268_v36 = vpop.eup %1267  ;;  %1289 = vtanh.f32 %v334_v37 }
  0xef   :  { %1136 = vmatprep.mubr.bf16.mxu1 %v400_v32  ;;  %v1270_v38 = vpop.eup %1269  ;;  %1291 = vtanh.f32 %v337_v39 }
  0xf0   :  { %1137 = vmatmul.mubr.bf16.gmra.mxu1 %v401_v33  ;;  %v1272_v40 = vpop.eup %1271  ;;  %v404_v47 = vpack.c.bf16 %v1270_v38, %v1268_v36  ;;  %1293 = vtanh.f32 %v329_v41  ;;  %1169 = vmatpush3.bf16.msra.mxu0 %v1239_v14 }
  0xf1   :  { %1295 = vtanh.f32 %v342_v50  ;;  %1170 = vmatprep.subr.bf16.mxu0 %v1240_v15 }
  0xf2   :  { %v1274_v43 = vpop.eup %1273  ;;  %1297 = vtanh.f32 %v350_v52 }
  0xf3   :  { %1299 = vtanh.f32 %v353_v54 }
  0xf4   :  { %v1276_v44 = vpop.eup %1275  ;;  %1301 = vtanh.f32 %v345_v56  ;;  %1171 = vmatpush3.bf16.msra.mxu0 %v1240_v15 }
  0xf5   :  { %v1278_v45 = vpop.eup %1277  ;;  %v402_v46 = vpack.c.bf16 %v1276_v44, %v1272_v40  ;;  %1303 = vtanh.f32 %v358_v62  ;;  %1172 = vmatprep.subr.bf16.mxu0 %v1241_v16 }
  0xf6   :  { %v403_v48 = vpack.c.bf16 %v1274_v43, %v1278_v45  ;;  %v1280_v51 = vpop.eup %1279  ;;  %1305 = vtanh.f32 %v361_v0 }
  0xf7   :  { %1140 = vmatprep.mubr.bf16.mxu1 %v402_v46  ;;  %v1282_v53 = vpop.eup %1281 }
  0xf8   :  { %1141 = vmatmul.mubr.bf16.gmra.mxu1 %v403_v48  ;;  %v1284_v55 = vpop.eup %1283  ;;  %1173 = vmatpush3.bf16.msra.mxu0 %v1241_v16 }
  0xf9   :  { %1144 = vmatprep.mubr.bf16.mxu1 %v404_v47  ;;  %v1286_v57 = vpop.eup %1285  ;;  %v406_v58 = vpack.c.bf16 %v1284_v55, %v1282_v53  ;;  %1174 = vmatprep.subr.bf16.mxu0 %v1242_v17 }
  0xfa   :  { %v405_v59 = vpack.c.bf16 %v1286_v57, %v1280_v51  ;;  %v1288_v60 = vpop.eup %1287 }
  0xfb   :  { %v1290_v61 = vpop.eup %1289 }
  0xfc   :  { %v1292_v63 = vpop.eup %1291  ;;  %1175 = vmatpush3.bf16.msra.mxu0 %v1242_v17 }
  0xfd   :  { %v1294_v1 = vpop.eup %1293  ;;  %v408_v2 = vpack.c.bf16 %v1292_v63, %v1290_v61 }
  0xfe   :  { %v407_v3 = vpack.c.bf16 %v1294_v1, %v1288_v60  ;;  %v1296_v4 = vpop.eup %1295 }
  0xff   :  { %v1298_v5 = vpop.eup %1297 }
 0x100   :  { %1145 = vmatmul.mubr.bf16.gmra.mxu1 %v405_v59  ;;  %v1300_v6 = vpop.eup %1299 }
 0x101   :  { %1148 = vmatprep.mubr.bf16.mxu1 %v406_v58  ;;  %v1302_v7 = vpop.eup %1301  ;;  %v410_v8 = vpack.c.bf16 %v1300_v6, %v1298_v5 }
 0x102   :  { %v409_v9 = vpack.c.bf16 %v1302_v7, %v1296_v4  ;;  %v1304_v10 = vpop.eup %1303 }
 0x103   :  { %v1306_v11 = vpop.eup %1305 }
 0x104   :  { %v411_v12 = vpack.c.bf16 %v1306_v11, %v1304_v10 }
 0x108   :  { %1149 = vmatmul.mubr.bf16.gmra.mxu1 %v407_v3 }
 0x109   :  { %1152 = vmatprep.mubr.bf16.mxu1 %v408_v2 }
 0x110   :  { %1153 = vmatmul.mubr.bf16.gmra.mxu1 %v409_v9 }
 0x111   :  { %1156 = vmatprep.mubr.bf16.mxu1 %v410_v8 }
 0x118   :  { %1157 = vmatmul.mubr.bf16.gmra.mxu1 %v411_v12 }
 0x1a0   :  { %v1130_v18 = vpop.f32.mrf.mxu1 }
 0x1a1   :  { %v526_v24 = vadd.f32 %v1130_v18, %v1584_v19 }
 0x1a2   :  { %v517_v20 = vpop.f32.mrf.mxu1 }
 0x1a3   :  { %v518_v21 = vadd.f32 %v1584_v19, %v517_v20 }
 0x1a4   :  { %v1131_v22 = vpop.f32.mrf.mxu1 }
 0x1a5   :  { %v529_v23 = vadd.f32 %v1131_v22, %v1584_v19  ;;  %1307 = vtanh.f32 %v518_v21 }
 0x1a6   :  { %v520_v25 = vpop.f32.mrf.mxu1 }
 0x1a7   :  { %v521_v26 = vadd.f32 %v1584_v19, %v520_v25  ;;  %1309 = vtanh.f32 %v529_v23 }
 0x1a8   :  { %v1134_v27 = vpop.f32.mrf.mxu1 }
 0x1a9   :  { %1311 = vtanh.f32 %v521_v26  ;;  %v542_v33 = vadd.f32 %v1134_v27, %v1584_v19 }
 0x1aa   :  { %1313 = vtanh.f32 %v526_v24  ;;  %v533_v29 = vpop.f32.mrf.mxu1 }
 0x1ab   :  { %v534_v30 = vadd.f32 %v1584_v19, %v533_v29 }
 0x1ac   :  { %v1135_v31 = vpop.f32.mrf.mxu1 }
 0x1ad   :  { %v545_v32 = vadd.f32 %v1135_v31, %v1584_v19  ;;  %1315 = vtanh.f32 %v534_v30 }
 0x1ae   :  { %v536_v34 = vpop.f32.mrf.mxu1 }
 0x1af   :  { %v537_v35 = vadd.f32 %v1584_v19, %v536_v34  ;;  %1317 = vtanh.f32 %v545_v32 }
 0x1b0   :  { %v1138_v36 = vpop.f32.mrf.mxu1 }
 0x1b1   :  { %1319 = vtanh.f32 %v537_v35  ;;  %v558_v44 = vadd.f32 %v1138_v36, %v1584_v19 }
 0x1b2   :  { %1321 = vtanh.f32 %v542_v33  ;;  %v549_v37 = vpop.f32.mrf.mxu1  ;;  %v1308_v39 = vpop.eup %1307 }
 0x1b3   :  { %v550_v38 = vadd.f32 %v1584_v19, %v549_v37 }
 0x1b4   :  { %v1139_v40 = vpop.f32.mrf.mxu1  ;;  %v1310_v41 = vpop.eup %1309 }
 0x1b5   :  { %v561_v42 = vadd.f32 %v1139_v40, %v1584_v19  ;;  %1323 = vtanh.f32 %v550_v38 }
 0x1b6   :  { %v1312_v43 = vpop.eup %1311  ;;  %v552_v45 = vpop.f32.mrf.mxu1 }
 0x1b7   :  { %v1314_v46 = vpop.eup %1313  ;;  %v553_v47 = vadd.f32 %v1584_v19, %v552_v45  ;;  %v676_v48 = vpack.c.bf16 %v1312_v43, %v1308_v39  ;;  %1325 = vtanh.f32 %v561_v42 }
 0x1b8   :  { %v1142_v49 = vpop.f32.mrf.mxu1  ;;  %v677_v50 = vpack.c.bf16 %v1310_v41, %v1314_v46 }
 0x1b9   :  { %1327 = vtanh.f32 %v553_v47  ;;  %1176 = vmatprep.mubr.bf16.mxu0 %v676_v48  ;;  %v574_v58 = vadd.f32 %v1142_v49, %v1584_v19 }
 0x1ba   :  { %1329 = vtanh.f32 %v558_v44  ;;  %v565_v51 = vpop.f32.mrf.mxu1  ;;  %1177 = vmatmul.mubr.bf16.vlgmr.msra.gmra.mxu0 %v677_v50  ;;  %v1316_v53 = vpop.eup %1315 }
 0x1bb   :  { %v566_v52 = vadd.f32 %v1584_v19, %v565_v51 }
 0x1bc   :  { %v1143_v54 = vpop.f32.mrf.mxu1  ;;  %v1318_v55 = vpop.eup %1317 }
 0x1bd   :  { %v577_v56 = vadd.f32 %v1143_v54, %v1584_v19  ;;  %1331 = vtanh.f32 %v566_v52 }
 0x1be   :  { %v1320_v57 = vpop.eup %1319  ;;  %v568_v59 = vpop.f32.mrf.mxu1 }
 0x1bf   :  { %v1322_v60 = vpop.eup %1321  ;;  %v569_v61 = vadd.f32 %v1584_v19, %v568_v59  ;;  %v678_v62 = vpack.c.bf16 %v1320_v57, %v1316_v53  ;;  %1333 = vtanh.f32 %v577_v56 }
 0x1c0   :  { %v1146_v63 = vpop.f32.mrf.mxu1  ;;  %v679_v0 = vpack.c.bf16 %v1318_v55, %v1322_v60 }
 0x1c1   :  { %1335 = vtanh.f32 %v569_v61  ;;  %1180 = vmatprep.mubr.bf16.mxu0 %v678_v62  ;;  %v590_v8 = vadd.f32 %v1146_v63, %v1584_v19 }
 0x1c2   :  { %1337 = vtanh.f32 %v574_v58  ;;  %v581_v1 = vpop.f32.mrf.mxu1  ;;  %1181 = vmatmul.mubr.bf16.gmra.mxu0 %v679_v0  ;;  %v1324_v3 = vpop.eup %1323 }
 0x1c3   :  { %v582_v2 = vadd.f32 %v1584_v19, %v581_v1 }
 0x1c4   :  { %v1147_v4 = vpop.f32.mrf.mxu1  ;;  %v1326_v5 = vpop.eup %1325 }
 0x1c5   :  { %v593_v6 = vadd.f32 %v1147_v4, %v1584_v19  ;;  %1339 = vtanh.f32 %v582_v2  ;;  %v1621_v4 = vld [vmem:[%s1789_s6] ss:$0 sm:$0xff] }
 0x1c6   :  { %v1328_v7 = vpop.eup %1327  ;;  %v584_v9 = vpop.f32.mrf.mxu1 }
 0x1c7   :  { %v1330_v10 = vpop.eup %1329  ;;  %v585_v11 = vadd.f32 %v1584_v19, %v584_v9  ;;  %v680_v12 = vpack.c.bf16 %v1328_v7, %v1324_v3  ;;  %1341 = vtanh.f32 %v593_v6 }
 0x1c8   :  { %v1150_v28 = vpop.f32.mrf.mxu1  ;;  %v681_v13 = vpack.c.bf16 %v1326_v5, %v1330_v10 }
 0x1c9   :  { %1343 = vtanh.f32 %v585_v11  ;;  %1184 = vmatprep.mubr.bf16.mxu0 %v680_v12  ;;  %v606_v22 = vadd.f32 %v1150_v28, %v1584_v19 }
 0x1ca   :  { %1345 = vtanh.f32 %v590_v8  ;;  %v597_v14 = vpop.f32.mrf.mxu1  ;;  %1185 = vmatmul.mubr.bf16.gmra.mxu0 %v681_v13  ;;  %v1332_v16 = vpop.eup %1331 }
 0x1cb   :  { %v598_v15 = vadd.f32 %v1584_v19, %v597_v14 }
 0x1cc   :  { %v1151_v17 = vpop.f32.mrf.mxu1  ;;  %v1334_v18 = vpop.eup %1333 }
 0x1cd   :  { %v609_v20 = vadd.f32 %v1151_v17, %v1584_v19  ;;  %1347 = vtanh.f32 %v598_v15 }
 0x1ce   :  { %v1336_v21 = vpop.eup %1335  ;;  %v600_v23 = vpop.f32.mrf.mxu1 }
 0x1cf   :  { %v1338_v24 = vpop.eup %1337  ;;  %v601_v25 = vadd.f32 %v1584_v19, %v600_v23  ;;  %v682_v26 = vpack.c.bf16 %v1336_v21, %v1332_v16  ;;  %1349 = vtanh.f32 %v609_v20 }
 0x1d0   :  { %v1154_v27 = vpop.f32.mrf.mxu1  ;;  %v683_v29 = vpack.c.bf16 %v1334_v18, %v1338_v24 }
 0x1d1   :  { %1351 = vtanh.f32 %v601_v25  ;;  %1188 = vmatprep.mubr.bf16.mxu0 %v682_v26  ;;  %v622_v37 = vadd.f32 %v1154_v27, %v1584_v19 }
 0x1d2   :  { %1353 = vtanh.f32 %v606_v22  ;;  %v613_v30 = vpop.f32.mrf.mxu1  ;;  %1189 = vmatmul.mubr.bf16.gmra.mxu0 %v683_v29  ;;  %v1340_v32 = vpop.eup %1339 }
 0x1d3   :  { %v614_v31 = vadd.f32 %v1584_v19, %v613_v30 }
 0x1d4   :  { %v1155_v33 = vpop.f32.mrf.mxu1  ;;  %v1342_v34 = vpop.eup %1341 }
 0x1d5   :  { %v625_v35 = vadd.f32 %v1155_v33, %v1584_v19  ;;  %1355 = vtanh.f32 %v614_v31 }
 0x1d6   :  { %v1344_v36 = vpop.eup %1343  ;;  %v616_v38 = vpop.f32.mrf.mxu1 }
 0x1d7   :  { %v1346_v39 = vpop.eup %1345  ;;  %v617_v40 = vadd.f32 %v1584_v19, %v616_v38  ;;  %v684_v41 = vpack.c.bf16 %v1344_v36, %v1340_v32  ;;  %1357 = vtanh.f32 %v625_v35 }
 0x1d8   :  { %v1158_v42 = vpop.f32.mrf.mxu1  ;;  %v685_v43 = vpack.c.bf16 %v1342_v34, %v1346_v39 }
 0x1d9   :  { %1359 = vtanh.f32 %v617_v40  ;;  %1192 = vmatprep.mubr.bf16.mxu0 %v684_v41  ;;  %v638_v51 = vadd.f32 %v1158_v42, %v1584_v19 }
 0x1da   :  { %1361 = vtanh.f32 %v622_v37  ;;  %v629_v44 = vpop.f32.mrf.mxu1  ;;  %1193 = vmatmul.mubr.bf16.gmra.mxu0 %v685_v43  ;;  %v1348_v46 = vpop.eup %1347 }
 0x1db   :  { %v630_v45 = vadd.f32 %v1584_v19, %v629_v44 }
 0x1dc   :  { %v1159_v47 = vpop.f32.mrf.mxu1  ;;  %v1350_v48 = vpop.eup %1349 }
 0x1dd   :  { %v641_v49 = vadd.f32 %v1159_v47, %v1584_v19  ;;  %1363 = vtanh.f32 %v630_v45 }
 0x1de   :  { %v1352_v50 = vpop.eup %1351  ;;  %v632_v52 = vpop.f32.mrf.mxu1 }
 0x1df   :  { %v1354_v53 = vpop.eup %1353  ;;  %v633_v54 = vadd.f32 %v1584_v19, %v632_v52  ;;  %v686_v55 = vpack.c.bf16 %v1352_v50, %v1348_v46  ;;  %1365 = vtanh.f32 %v641_v49 }
 0x1e0   :  { %v687_v56 = vpack.c.bf16 %v1350_v48, %v1354_v53 }
 0x1e1   :  { %1367 = vtanh.f32 %v633_v54  ;;  %1196 = vmatprep.mubr.bf16.mxu0 %v686_v55 }
 0x1e2   :  { %1369 = vtanh.f32 %v638_v51  ;;  %1197 = vmatmul.mubr.bf16.gmra.mxu0 %v687_v56  ;;  %v1356_v57 = vpop.eup %1355 }
 0x1e4   :  { %v1358_v58 = vpop.eup %1357 }
 0x1e6   :  { %v1360_v59 = vpop.eup %1359 }
 0x1e7   :  { %v1362_v60 = vpop.eup %1361  ;;  %v688_v61 = vpack.c.bf16 %v1360_v59, %v1356_v57 }
 0x1e8   :  { %v689_v62 = vpack.c.bf16 %v1358_v58, %v1362_v60 }
 0x1e9   :  { %1200 = vmatprep.mubr.bf16.mxu0 %v688_v61 }
 0x1ea   :  { %1201 = vmatmul.mubr.bf16.gmra.mxu0 %v689_v62  ;;  %v1364_v63 = vpop.eup %1363 }
 0x1ec   :  { %v1366_v0 = vpop.eup %1365 }
 0x1ee   :  { %v1368_v1 = vpop.eup %1367 }
 0x1ef   :  { %v1370_v2 = vpop.eup %1369  ;;  %v690_v19 = vpack.c.bf16 %v1368_v1, %v1364_v63 }
 0x1f0   :  { %v691_v3 = vpack.c.bf16 %v1366_v0, %v1370_v2 }
 0x1f1   :  { %1204 = vmatprep.mubr.bf16.mxu0 %v690_v19 }
 0x1f2   :  { %1205 = vmatmul.mubr.bf16.gmra.mxu0 %v691_v3 }
 0x27a   :  { %v1178_v5 = vpop.f32.mrf.mxu0 }
 0x27b   :  { %v806_v6 = vadd.f32 %v1178_v5, %v1621_v4 }
 0x27c   :  { %v797_v7 = vpop.f32.mrf.mxu0 }
 0x27d   :  { %927 = vst.msk [vmem:[%s1790_s7 + $0x10] sm:$0xff] %vm924_vm1, %v806_v6  ;;  %v798_v8 = vadd.f32 %v1621_v4, %v797_v7 }
 0x27e   :  { %v1179_v9 = vpop.f32.mrf.mxu0 }
 0x27f   :  { %925 = vst.msk [vmem:[%s1790_s7] sm:$0xff] %vm924_vm1, %v798_v8  ;;  %v809_v10 = vadd.f32 %v1179_v9, %v1621_v4 }
 0x280   :  { %v800_v11 = vpop.f32.mrf.mxu0 }
 0x281   :  { %928 = vst.msk [vmem:[%s1790_s7 + $0x18] sm:$0xff] %vm924_vm1, %v809_v10  ;;  %v801_v12 = vadd.f32 %v1621_v4, %v800_v11 }
 0x282   :  { %v1182_v28 = vpop.f32.mrf.mxu0 }
 0x283   :  { %926 = vst.msk [vmem:[%s1790_s7 + $0x8] sm:$0xff] %vm924_vm1, %v801_v12  ;;  %v822_v13 = vadd.f32 %v1182_v28, %v1621_v4 }
 0x284   :  { %v813_v14 = vpop.f32.mrf.mxu0 }
 0x285   :  { %931 = vst.msk [vmem:[%s1790_s7 + $0x30] sm:$0xff] %vm924_vm1, %v822_v13  ;;  %v814_v15 = vadd.f32 %v1621_v4, %v813_v14 }
 0x286   :  { %v1183_v16 = vpop.f32.mrf.mxu0 }
 0x287   :  { %929 = vst.msk [vmem:[%s1790_s7 + $0x20] sm:$0xff] %vm924_vm1, %v814_v15  ;;  %v825_v17 = vadd.f32 %v1183_v16, %v1621_v4 }
 0x288   :  { %v816_v18 = vpop.f32.mrf.mxu0 }
 0x289   :  { %932 = vst.msk [vmem:[%s1790_s7 + $0x38] sm:$0xff] %vm924_vm1, %v825_v17  ;;  %v817_v20 = vadd.f32 %v1621_v4, %v816_v18 }
 0x28a   :  { %v1186_v21 = vpop.f32.mrf.mxu0 }
 0x28b   :  { %930 = vst.msk [vmem:[%s1790_s7 + $0x28] sm:$0xff] %vm924_vm1, %v817_v20  ;;  %v838_v22 = vadd.f32 %v1186_v21, %v1621_v4 }
 0x28c   :  { %v829_v23 = vpop.f32.mrf.mxu0 }
 0x28d   :  { %935 = vst.msk [vmem:[%s1790_s7 + $0x50] sm:$0xff] %vm924_vm1, %v838_v22  ;;  %v830_v24 = vadd.f32 %v1621_v4, %v829_v23 }
 0x28e   :  { %v1187_v25 = vpop.f32.mrf.mxu0 }
 0x28f   :  { %933 = vst.msk [vmem:[%s1790_s7 + $0x40] sm:$0xff] %vm924_vm1, %v830_v24  ;;  %v841_v26 = vadd.f32 %v1187_v25, %v1621_v4 }
 0x290   :  { %v832_v27 = vpop.f32.mrf.mxu0 }
 0x291   :  { %936 = vst.msk [vmem:[%s1790_s7 + $0x58] sm:$0xff] %vm924_vm1, %v841_v26  ;;  %v833_v29 = vadd.f32 %v1621_v4, %v832_v27 }
 0x292   :  { %v1190_v30 = vpop.f32.mrf.mxu0 }
 0x293   :  { %934 = vst.msk [vmem:[%s1790_s7 + $0x48] sm:$0xff] %vm924_vm1, %v833_v29  ;;  %v854_v31 = vadd.f32 %v1190_v30, %v1621_v4 }
 0x294   :  { %v845_v32 = vpop.f32.mrf.mxu0 }
 0x295   :  { %939 = vst.msk [vmem:[%s1790_s7 + $0x70] sm:$0xff] %vm924_vm1, %v854_v31  ;;  %v846_v33 = vadd.f32 %v1621_v4, %v845_v32 }
 0x296   :  { %v1191_v34 = vpop.f32.mrf.mxu0 }
 0x297   :  { %937 = vst.msk [vmem:[%s1790_s7 + $0x60] sm:$0xff] %vm924_vm1, %v846_v33  ;;  %v857_v35 = vadd.f32 %v1191_v34, %v1621_v4 }
 0x298   :  { %v848_v36 = vpop.f32.mrf.mxu0 }
 0x299   :  { %940 = vst.msk [vmem:[%s1790_s7 + $0x78] sm:$0xff] %vm924_vm1, %v857_v35  ;;  %v849_v37 = vadd.f32 %v1621_v4, %v848_v36 }
 0x29a   :  { %v1194_v38 = vpop.f32.mrf.mxu0 }
 0x29b   :  { %938 = vst.msk [vmem:[%s1790_s7 + $0x68] sm:$0xff] %vm924_vm1, %v849_v37  ;;  %v870_v39 = vadd.f32 %v1194_v38, %v1621_v4 }
 0x29c   :  { %v861_v40 = vpop.f32.mrf.mxu0 }
 0x29d   :  { %943 = vst.msk [vmem:[%s1790_s7 + $0x90] sm:$0xff] %vm924_vm1, %v870_v39  ;;  %v862_v41 = vadd.f32 %v1621_v4, %v861_v40 }
 0x29e   :  { %v1195_v42 = vpop.f32.mrf.mxu0 }
 0x29f   :  { %941 = vst.msk [vmem:[%s1790_s7 + $0x80] sm:$0xff] %vm924_vm1, %v862_v41  ;;  %v873_v43 = vadd.f32 %v1195_v42, %v1621_v4 }
 0x2a0   :  { %v864_v44 = vpop.f32.mrf.mxu0 }
 0x2a1   :  { %944 = vst.msk [vmem:[%s1790_s7 + $0x98] sm:$0xff] %vm924_vm1, %v873_v43  ;;  %v865_v45 = vadd.f32 %v1621_v4, %v864_v44 }
 0x2a2   :  { %v1198_v46 = vpop.f32.mrf.mxu0 }
 0x2a3   :  { %942 = vst.msk [vmem:[%s1790_s7 + $0x88] sm:$0xff] %vm924_vm1, %v865_v45  ;;  %v886_v47 = vadd.f32 %v1198_v46, %v1621_v4 }
 0x2a4   :  { %v877_v48 = vpop.f32.mrf.mxu0 }
 0x2a5   :  { %947 = vst.msk [vmem:[%s1790_s7 + $0xb0] sm:$0xff] %vm924_vm1, %v886_v47  ;;  %v878_v49 = vadd.f32 %v1621_v4, %v877_v48 }
 0x2a6   :  { %v1199_v50 = vpop.f32.mrf.mxu0 }
 0x2a7   :  { %945 = vst.msk [vmem:[%s1790_s7 + $0xa0] sm:$0xff] %vm924_vm1, %v878_v49  ;;  %v889_v51 = vadd.f32 %v1199_v50, %v1621_v4 }
 0x2a8   :  { %v880_v52 = vpop.f32.mrf.mxu0 }
 0x2a9   :  { %948 = vst.msk [vmem:[%s1790_s7 + $0xb8] sm:$0xff] %vm924_vm1, %v889_v51  ;;  %v881_v53 = vadd.f32 %v1621_v4, %v880_v52 }
 0x2aa   :  { %v1202_v54 = vpop.f32.mrf.mxu0 }
 0x2ab   :  { %946 = vst.msk [vmem:[%s1790_s7 + $0xa8] sm:$0xff] %vm924_vm1, %v881_v53  ;;  %v902_v55 = vadd.f32 %v1202_v54, %v1621_v4 }
 0x2ac   :  { %v893_v56 = vpop.f32.mrf.mxu0 }
 0x2ad   :  { %951 = vst.msk [vmem:[%s1790_s7 + $0xd0] sm:$0xff] %vm924_vm1, %v902_v55  ;;  %v894_v57 = vadd.f32 %v1621_v4, %v893_v56 }
 0x2ae   :  { %v1203_v58 = vpop.f32.mrf.mxu0 }
 0x2af   :  { %949 = vst.msk [vmem:[%s1790_s7 + $0xc0] sm:$0xff] %vm924_vm1, %v894_v57  ;;  %v905_v59 = vadd.f32 %v1203_v58, %v1621_v4 }
 0x2b0   :  { %v896_v60 = vpop.f32.mrf.mxu0 }
 0x2b1   :  { %952 = vst.msk [vmem:[%s1790_s7 + $0xd8] sm:$0xff] %vm924_vm1, %v905_v59  ;;  %v897_v61 = vadd.f32 %v1621_v4, %v896_v60 }
 0x2b2   :  { %v1206_v62 = vpop.f32.mrf.mxu0 }
 0x2b3   :  { %950 = vst.msk [vmem:[%s1790_s7 + $0xc8] sm:$0xff] %vm924_vm1, %v897_v61  ;;  %v918_v63 = vadd.f32 %v1206_v62, %v1621_v4 }
 0x2b4   :  { %v909_v0 = vpop.f32.mrf.mxu0 }
 0x2b5   :  { %955 = vst.msk [vmem:[%s1790_s7 + $0xf0] sm:$0xff] %vm924_vm1, %v918_v63  ;;  %v910_v1 = vadd.f32 %v1621_v4, %v909_v0 }
 0x2b6   :  { %v1207_v2 = vpop.f32.mrf.mxu0 }
 0x2b7   :  { %953 = vst.msk [vmem:[%s1790_s7 + $0xe0] sm:$0xff] %vm924_vm1, %v910_v1  ;;  %v921_v19 = vadd.f32 %v1207_v2, %v1621_v4 }
 0x2b8   :  { %v912_v3 = vpop.f32.mrf.mxu0 }
 0x2b9   :  { %956 = vst.msk [vmem:[%s1790_s7 + $0xf8] sm:$0xff] %vm924_vm1, %v921_v19  ;;  %v913_v5 = vadd.f32 %v1621_v4, %v912_v3 }
 0x2bb   :  { %954 = vst.msk [vmem:[%s1790_s7 + $0xe8] sm:$0xff] %vm924_vm1, %v913_v5 }

</bundles_post_ra>
